<compile_context>
chip_gen: v7x
topology: tpu7x:2x2x1
jax: 0.10.0
libtpu: 0.0.40
codegen_flags: <defaults>
</compile_context>

<pallas_src>
import jax
import jax.numpy as jnp
from jax.experimental import pallas as pl
from jax.experimental.pallas import tpu as pltpu


def fusion_kernel(w_ref, d_ref, new_in_ref, new_out_ref):
    # w_ref: (8, TL)   -- stacked weights, constant block across the grid.
    # d_ref: (8, TR, TL) -- stacked data tensors in call-argument order:
    #   0=inin, 1=inout, 2=outout, 3=outin,
    #   4=or_inin, 5=or_inout, 6=or_outout, 7=or_outin
    # Weight rows: 0..3 = w1_in..w4_in, 4..7 = w1_out..w4_out.
    w = w_ref[...]  # read once per invocation; (TL,) rows broadcast along sublanes

    new_in_ref[...] = (
        w[0] * d_ref[0]
        + w[1] * d_ref[1]
        + w[2] * d_ref[4]
        + w[3] * d_ref[7]
    )
    new_out_ref[...] = (
        w[4] * d_ref[2]
        + w[5] * d_ref[3]
        + w[6] * d_ref[6]
        + w[7] * d_ref[5]
    )


def _pick_tile(total, target, quantum):
    """Largest divisor of `total` that is a multiple of `quantum` and <= target.

    Falls back to the full extent (always a legal block dim) if `total` is
    small or has no suitable divisor.
    """
    if total <= target:
        return total
    t = (target // quantum) * quantum
    while t >= quantum:
        if total % t == 0:
            return t
        t -= quantum
    return total


def fusion_integrator(weights, data):
    """weights: 8 arrays of shape (1, C, N, 1); data: 8 arrays of (B, C, N, T).

    Returns (new_in, new_out), each of shape (B, C, N, T), matching the
    PyTorch module semantics.
    """
    B, C, N, T = data[0].shape
    dtype = data[0].dtype
    rows = B * T
    lanes = C * N

    # ---- wrapper-side re-layout to lane-dense (rows, lanes) ----------------
    # (8, B, C, N, T) -> (8, B, T, C, N) -> (8, B*T, C*N)
    d = jnp.stack(data, axis=0)
    d = jnp.transpose(d, (0, 1, 4, 2, 3)).reshape(8, rows, lanes)
    # (1, C, N, 1) -> (C*N,) ; stack -> (8, C*N)
    w = jnp.stack([wi.reshape(lanes) for wi in weights], axis=0).astype(dtype)

    # ---- tile sizing (VMEM-aware: fits v7x's 64 MiB with headroom) ---------
    tr = _pick_tile(rows, 256, 8)     # row (sublane) tile
    tl = _pick_tile(lanes, 1024, 128)  # lane tile
    grid = (rows // tr, lanes // tl)

    itemsize = jnp.dtype(dtype).itemsize
    block_bytes = (8 * tr * tl + 8 * tl + 2 * tr * tl) * itemsize
    vmem_limit = min(48 * 1024 * 1024, max(32 * 1024 * 1024, 3 * block_bytes))

    w_spec = pl.BlockSpec((8, tl), lambda r, l: (0, l))          # constant row index
    d_spec = pl.BlockSpec((8, tr, tl), lambda r, l: (0, r, l))   # one fat DMA / step
    o_spec = pl.BlockSpec((tr, tl), lambda r, l: (r, l))         # lane-dense stores

    new_in_2d, new_out_2d = pl.pallas_call(
        fusion_kernel,
        grid=grid,
        in_specs=[w_spec, d_spec],
        out_specs=(o_spec, o_spec),
        out_shape=(
            jax.ShapeDtypeStruct((rows, lanes), dtype),
            jax.ShapeDtypeStruct((rows, lanes), dtype),
        ),
        compiler_params=pltpu.CompilerParams(
            dimension_semantics=("parallel", "parallel"),
            vmem_limit_bytes=vmem_limit,
        ),
    )(w, d)

    # ---- back to the PyTorch (B, C, N, T) layout ----------------------------
    def back(x2d):
        return jnp.transpose(x2d.reshape(B, T, C, N), (0, 2, 3, 1))

    return back(new_in_2d), back(new_out_2d)


def reference(weights, data):
    (w1i, w2i, w3i, w4i, w1o, w2o, w3o, w4o) = weights
    (inin, inout, outout, outin, or_inin, or_inout, or_outout, or_outin) = data
    new_in = w1i * inin + w2i * inout + w3i * or_inin + w4i * or_outin
    new_out = w1o * outout + w2o * outin + w3o * or_outout + w4o * or_inout
    return new_in, new_out


if __name__ == "__main__":
    # Small shapes consistent with the module: (B, mid_channels, node_num, T).
    # C*N = 128 => exactly one full lane tile after the re-layout.
    B, C, N, T = 2, 8, 16, 8
    key = jax.random.PRNGKey(0)

    # Deterministic parameter init (torch.randn equivalent), shapes (1, C, N, 1).
    wkeys = jax.random.split(key, 9)
    weights = tuple(
        jax.random.normal(wkeys[i], (1, C, N, 1), dtype=jnp.float32)
        for i in range(8)
    )

    # Deterministic example inputs, shapes (B, C, N, T).
    dkeys = jax.random.split(wkeys[8], 8)
    data = tuple(
        jax.random.normal(dkeys[i], (B, C, N, T), dtype=jnp.float32)
        for i in range(8)
    )

    new_in, new_out = fusion_integrator(weights, data)
    jax.block_until_ready((new_in, new_out))

    ref_in, ref_out = reference(weights, data)
    assert jnp.allclose(new_in, ref_in, atol=1e-5, rtol=1e-5)
    assert jnp.allclose(new_out, ref_out, atol=1e-5, rtol=1e-5)

    print("KERNEL_OK")
</pallas_src>

<mosaic_0001>
module attributes {stable_mosaic.version = 11 : i64} {
  func.func @fusion_kernel(%arg0: i32, %arg1: i32, %arg2: memref<8x128xf32, #tpu.memory_space<vmem>>, %arg3: memref<8x16x128xf32, #tpu.memory_space<vmem>>, %arg4: memref<16x128xf32, #tpu.memory_space<vmem>>, %arg5: memref<16x128xf32, #tpu.memory_space<vmem>>) attributes {dimension_semantics = [#tpu.dimension_semantics<parallel>, #tpu.dimension_semantics<parallel>], iteration_bounds = array<i64: 1, 1>, scalar_prefetch = 0 : i64, scratch_operands = 0 : i64, tpu.core_type = #tpu.core_type<tc>, window_params = [{transform_indices = @transform_0, window_bounds = array<i64: 8, 128>}, {transform_indices = @transform_1, window_bounds = array<i64: 8, 16, 128>}, {transform_indices = @transform_2, window_bounds = array<i64: 16, 128>}, {transform_indices = @transform_3, window_bounds = array<i64: 16, 128>}]} {
    %c0 = arith.constant 0 : index
    %c0_0 = arith.constant 0 : index
    %0 = vector.load %arg2[%c0, %c0_0] : memref<8x128xf32, #tpu.memory_space<vmem>>, vector<8x128xf32>
    %1 = vector.extract_strided_slice %0 {offsets = [0, 0], sizes = [1, 128], strides = [1, 1]} : vector<8x128xf32> to vector<1x128xf32>
    %2 = vector.shape_cast %1 : vector<1x128xf32> to vector<128xf32>
    %c0_1 = arith.constant 0 : index
    %c0_2 = arith.constant 0 : index
    %c0_3 = arith.constant 0 : index
    %3 = vector.load %arg3[%c0_1, %c0_2, %c0_3] : memref<8x16x128xf32, #tpu.memory_space<vmem>>, vector<1x16x128xf32>
    %4 = vector.shape_cast %3 : vector<1x16x128xf32> to vector<16x128xf32>
    %5 = vector.shape_cast %2 : vector<128xf32> to vector<1x128xf32>
    %6 = vector.broadcast %5 : vector<1x128xf32> to vector<16x128xf32>
    %7 = arith.mulf %6, %4 : vector<16x128xf32>
    %8 = vector.extract_strided_slice %0 {offsets = [1, 0], sizes = [1, 128], strides = [1, 1]} : vector<8x128xf32> to vector<1x128xf32>
    %9 = vector.shape_cast %8 : vector<1x128xf32> to vector<128xf32>
    %c1 = arith.constant 1 : index
    %c0_4 = arith.constant 0 : index
    %c0_5 = arith.constant 0 : index
    %10 = vector.load %arg3[%c1, %c0_4, %c0_5] : memref<8x16x128xf32, #tpu.memory_space<vmem>>, vector<1x16x128xf32>
    %11 = vector.shape_cast %10 : vector<1x16x128xf32> to vector<16x128xf32>
    %12 = vector.shape_cast %9 : vector<128xf32> to vector<1x128xf32>
    %13 = vector.broadcast %12 : vector<1x128xf32> to vector<16x128xf32>
    %14 = arith.mulf %13, %11 : vector<16x128xf32>
    %15 = arith.addf %7, %14 : vector<16x128xf32>
    %16 = vector.extract_strided_slice %0 {offsets = [2, 0], sizes = [1, 128], strides = [1, 1]} : vector<8x128xf32> to vector<1x128xf32>
    %17 = vector.shape_cast %16 : vector<1x128xf32> to vector<128xf32>
    %c4 = arith.constant 4 : index
    %c0_6 = arith.constant 0 : index
    %c0_7 = arith.constant 0 : index
    %18 = vector.load %arg3[%c4, %c0_6, %c0_7] : memref<8x16x128xf32, #tpu.memory_space<vmem>>, vector<1x16x128xf32>
    %19 = vector.shape_cast %18 : vector<1x16x128xf32> to vector<16x128xf32>
    %20 = vector.shape_cast %17 : vector<128xf32> to vector<1x128xf32>
    %21 = vector.broadcast %20 : vector<1x128xf32> to vector<16x128xf32>
    %22 = arith.mulf %21, %19 : vector<16x128xf32>
    %23 = arith.addf %15, %22 : vector<16x128xf32>
    %24 = vector.extract_strided_slice %0 {offsets = [3, 0], sizes = [1, 128], strides = [1, 1]} : vector<8x128xf32> to vector<1x128xf32>
    %25 = vector.shape_cast %24 : vector<1x128xf32> to vector<128xf32>
    %c7 = arith.constant 7 : index
    %c0_8 = arith.constant 0 : index
    %c0_9 = arith.constant 0 : index
    %26 = vector.load %arg3[%c7, %c0_8, %c0_9] : memref<8x16x128xf32, #tpu.memory_space<vmem>>, vector<1x16x128xf32>
    %27 = vector.shape_cast %26 : vector<1x16x128xf32> to vector<16x128xf32>
    %28 = vector.shape_cast %25 : vector<128xf32> to vector<1x128xf32>
    %29 = vector.broadcast %28 : vector<1x128xf32> to vector<16x128xf32>
    %30 = arith.mulf %29, %27 : vector<16x128xf32>
    %31 = arith.addf %23, %30 : vector<16x128xf32>
    %c0_10 = arith.constant 0 : index
    %c0_11 = arith.constant 0 : index
    %32 = vector.load %arg4[%c0_10, %c0_11] : memref<16x128xf32, #tpu.memory_space<vmem>>, vector<16x128xf32>
    tpu.vector_store %arg4[%c0_10, %c0_11], %31 {strides = array<i32>} : memref<16x128xf32, #tpu.memory_space<vmem>>, vector<16x128xf32>,
    %33 = vector.extract_strided_slice %0 {offsets = [4, 0], sizes = [1, 128], strides = [1, 1]} : vector<8x128xf32> to vector<1x128xf32>
    %34 = vector.shape_cast %33 : vector<1x128xf32> to vector<128xf32>
    %c2 = arith.constant 2 : index
    %c0_12 = arith.constant 0 : index
    %c0_13 = arith.constant 0 : index
    %35 = vector.load %arg3[%c2, %c0_12, %c0_13] : memref<8x16x128xf32, #tpu.memory_space<vmem>>, vector<1x16x128xf32>
    %36 = vector.shape_cast %35 : vector<1x16x128xf32> to vector<16x128xf32>
    %37 = vector.shape_cast %34 : vector<128xf32> to vector<1x128xf32>
    %38 = vector.broadcast %37 : vector<1x128xf32> to vector<16x128xf32>
    %39 = arith.mulf %38, %36 : vector<16x128xf32>
    %40 = vector.extract_strided_slice %0 {offsets = [5, 0], sizes = [1, 128], strides = [1, 1]} : vector<8x128xf32> to vector<1x128xf32>
    %41 = vector.shape_cast %40 : vector<1x128xf32> to vector<128xf32>
    %c3 = arith.constant 3 : index
    %c0_14 = arith.constant 0 : index
    %c0_15 = arith.constant 0 : index
    %42 = vector.load %arg3[%c3, %c0_14, %c0_15] : memref<8x16x128xf32, #tpu.memory_space<vmem>>, vector<1x16x128xf32>
    %43 = vector.shape_cast %42 : vector<1x16x128xf32> to vector<16x128xf32>
    %44 = vector.shape_cast %41 : vector<128xf32> to vector<1x128xf32>
    %45 = vector.broadcast %44 : vector<1x128xf32> to vector<16x128xf32>
    %46 = arith.mulf %45, %43 : vector<16x128xf32>
    %47 = arith.addf %39, %46 : vector<16x128xf32>
    %48 = vector.extract_strided_slice %0 {offsets = [6, 0], sizes = [1, 128], strides = [1, 1]} : vector<8x128xf32> to vector<1x128xf32>
    %49 = vector.shape_cast %48 : vector<1x128xf32> to vector<128xf32>
    %c6 = arith.constant 6 : index
    %c0_16 = arith.constant 0 : index
    %c0_17 = arith.constant 0 : index
    %50 = vector.load %arg3[%c6, %c0_16, %c0_17] : memref<8x16x128xf32, #tpu.memory_space<vmem>>, vector<1x16x128xf32>
    %51 = vector.shape_cast %50 : vector<1x16x128xf32> to vector<16x128xf32>
    %52 = vector.shape_cast %49 : vector<128xf32> to vector<1x128xf32>
    %53 = vector.broadcast %52 : vector<1x128xf32> to vector<16x128xf32>
    %54 = arith.mulf %53, %51 : vector<16x128xf32>
    %55 = arith.addf %47, %54 : vector<16x128xf32>
    %56 = vector.extract_strided_slice %0 {offsets = [7, 0], sizes = [1, 128], strides = [1, 1]} : vector<8x128xf32> to vector<1x128xf32>
    %57 = vector.shape_cast %56 : vector<1x128xf32> to vector<128xf32>
    %c5 = arith.constant 5 : index
    %c0_18 = arith.constant 0 : index
    %c0_19 = arith.constant 0 : index
    %58 = vector.load %arg3[%c5, %c0_18, %c0_19] : memref<8x16x128xf32, #tpu.memory_space<vmem>>, vector<1x16x128xf32>
    %59 = vector.shape_cast %58 : vector<1x16x128xf32> to vector<16x128xf32>
    %60 = vector.shape_cast %57 : vector<128xf32> to vector<1x128xf32>
    %61 = vector.broadcast %60 : vector<1x128xf32> to vector<16x128xf32>
    %62 = arith.mulf %61, %59 : vector<16x128xf32>
    %63 = arith.addf %55, %62 : vector<16x128xf32>
    %c0_20 = arith.constant 0 : index
    %c0_21 = arith.constant 0 : index
    %64 = vector.load %arg5[%c0_20, %c0_21] : memref<16x128xf32, #tpu.memory_space<vmem>>, vector<16x128xf32>
    tpu.vector_store %arg5[%c0_20, %c0_21], %63 {strides = array<i32>} : memref<16x128xf32, #tpu.memory_space<vmem>>, vector<16x128xf32>,
    return
  }
  func.func @transform_0(%arg0: i32, %arg1: i32) -> (i32, i32) {
    %c0_i32 = arith.constant 0 : i32
    %c0_i32_0 = arith.constant 0 : i32
    return %c0_i32, %arg1 : i32, i32
  }
  func.func @transform_1(%arg0: i32, %arg1: i32) -> (i32, i32, i32) {
    %c0_i32 = arith.constant 0 : i32
    %c0_i32_0 = arith.constant 0 : i32
    return %c0_i32, %arg0, %arg1 : i32, i32, i32
  }
  func.func @transform_2(%arg0: i32, %arg1: i32) -> (i32, i32) {
    %c0_i32 = arith.constant 0 : i32
    return %arg0, %arg1 : i32, i32
  }
  func.func @transform_3(%arg0: i32, %arg1: i32) -> (i32, i32) {
    %c0_i32 = arith.constant 0 : i32
    return %arg0, %arg1 : i32, i32
  }
}

</mosaic_0001>

<bundles_post_ra>
// kernel: tpu_custom_call.1
= control target key start
LH: loop header
LB: loop body
LE: loop exit
PB: predicated region body
PF: predicated region fallthrough
CT: control target
= control target key end

     0   :  { %9 = vsyncpa [#allocation3], 0  ;;  %s362_s0 = inlined_call_operand.hbm [shape: f32[8,128], index: 0, kind: input, shape index: {}]   ;;  %s363_s1 = inlined_call_operand.hbm [shape: f32[8,16,128], index: 1, kind: input, shape index: {}]   ;;  %s364_s2 = inlined_call_operand.hbm [shape: f32[16,128], index: 2, kind: output, shape index: {0}]   ;;  %s365_s3 = inlined_call_operand.hbm [shape: f32[16,128], index: 3, kind: output, shape index: {1}]  }
   0x1   :  { %10 = vsyncpa [#allocation6], 0 }
   0x2   :  { %11 = vsyncpa [#allocation4], 0 }
   0x3   :  { %12 = vsyncpa [#allocation9], 0  ;;  %s265_s12 = smov [#allocation2]   ;;  %s266_s14 = smov [#allocation5]  }
   0x4   :  { %s19_s13 = sshll.u32 %s265_s12, 4  ;;  %s28_s15 = sshll.u32 %s266_s14, 4  ;;  %s20_s13 = int_to_ptr.vmem [resolvable:$true] %s19_s13  ;;  %s291_s15 = int_to_ptr.vmem [resolvable:$true] %s28_s15 }
   0x5   :  { %s169_s18 = scalar_lea.hbm %s362_s0, 128 }
   0x6   :  { %p170_p0 = scmp.ne.s32.totalorder %s362_s0, %s169_s18  ;;  %p173_p1 = scmp.lt.u32.totalorder %s169_s18, %s362_s0 }
   0x8   :  { %p175_p2 = pnand %p173_p1, %p170_p0 }
   0xa   :  { %178 = shalt.err (!%p175_p2)
}
   0xb   :  { %s179_s23 = scalar_lea.vmem %s20_s13, 128  ;;  %p184_p4 = scmp.lt.s32.totalorder %s20_s13, %s20_s13 }
   0xc   :  { %p180_p3 = scmp.ne.s32.totalorder %s20_s13, %s179_s23  ;;  %p185_p5 = scmp.lt.s32.totalorder %s179_s23, %s179_s23 }
   0xe   :  { %p186_p6 = por %p185_p5, %p184_p4 }
  0x10   :  { %p187_p7 = pnand %p186_p6, %p180_p3 }
  0x12   :  { %190 = shalt.err (!%p187_p7)
}
  0x13   :  { %22 = dma.hbm_to_vmem [thread:$0]  %s362_s0, 128, %s20_s13, [#allocation3]  }
  0x14   :  { %s191_s28 = scalar_lea.hbm %s363_s1, 2048 }
  0x15   :  { %p192_p8 = scmp.ne.s32.totalorder %s363_s1, %s191_s28  ;;  %p195_p9 = scmp.lt.u32.totalorder %s191_s28, %s363_s1 }
  0x17   :  { %p197_p10 = pnand %p195_p9, %p192_p8 }
  0x19   :  { %200 = shalt.err (!%p197_p10)
}
  0x1a   :  { %s201_s6 = scalar_lea.vmem %s291_s15, 2048  ;;  %p206_p12 = scmp.lt.s32.totalorder %s291_s15, %s291_s15 }
  0x1b   :  { %p202_p11 = scmp.ne.s32.totalorder %s291_s15, %s201_s6  ;;  %p207_p13 = scmp.lt.s32.totalorder %s201_s6, %s201_s6 }
  0x1d   :  { %p208_p0 = por %p207_p13, %p206_p12 }
  0x1f   :  { %p209_p1 = pnand %p208_p0, %p202_p11 }
  0x21   :  { %212 = shalt.err (!%p209_p1)
}
  0x22   :  { %s267_s0 = smov 128   ;;  %s268_s7 = smov 8  }
  0x23   :  { %34 = dma.hbm_to_vmem [thread:$0]  %s363_s1, 2048, %s291_s15, [#allocation6], %s267_s0, %s267_s0, %s268_s7  }
  0x24   :  { %257 = dma.done.wait [#allocation3], 128  }
  0x25   :  { %258 = vsyncadd [#allocation3], 4294967168 }
  0x26   :  { %259 = dma.done.wait [#allocation6], 2048  }
  0x27   :  { %260 = vsyncadd [#allocation6], 4294965248  ;;  %v44_v0 = vlaneseq  ;;  %v41_v10 = vld [vmem:[#allocation2] sm:$0xff]  ;;  %v42_v11 = vld [vmem:[#allocation5] sm:$0xff]  ;;  %s269_s1 = smov [#allocation7]   ;;  %s270_s11 = smov [#allocation8]  }
  0x28   :  { %v51_v12 = vld [vmem:[#allocation5 + $0x10] sm:$0xff]  ;;  %v62_v15 = vld [vmem:[#allocation5 + $0x40] sm:$0xff]  ;;  %v43_v19 = vld [vmem:[#allocation5 + $0x8] sm:$0xff]  ;;  %s134_s10 = sshll.u32 %s269_s1, 4  ;;  %s146_s12 = sshll.u32 %s270_s11, 4  ;;  %s135_s10 = int_to_ptr.vmem [resolvable:$true] %s134_s10  ;;  %s325_s12 = int_to_ptr.vmem [resolvable:$true] %s146_s12 }
  0x29   :  { %v45_v1 = vshrl.u32 %v44_v0, 7  ;;  %v73_v17 = vld [vmem:[#allocation5 + $0x70] sm:$0xff]  ;;  %v52_v20 = vld [vmem:[#allocation5 + $0x18] sm:$0xff]  ;;  %v63_v21 = vld [vmem:[#allocation5 + $0x48] sm:$0xff]  ;;  %s213_s13 = scalar_lea.vmem %s135_s10, 256  ;;  %p218_p3 = scmp.lt.s32.totalorder %s135_s10, %s135_s10 }
  0x2a   :  { %v74_v22 = vld [vmem:[#allocation5 + $0x78] sm:$0xff]  ;;  %v86_v29 = vld [vmem:[#allocation5 + $0x20] sm:$0xff]  ;;  %v95_v30 = vld [vmem:[#allocation5 + $0x30] sm:$0xff]  ;;  %p214_p2 = scmp.ne.s32.totalorder %s135_s10, %s213_s13  ;;  %p219_p4 = scmp.lt.s32.totalorder %s213_s13, %s213_s13 }
  0x2b   :  { %v46_v2 = vsub.s32 0, %v45_v1  ;;  %v55_v3 = vsub.s32 1, %v45_v1  ;;  %v66_v4 = vsub.s32 2, %v45_v1  ;;  %v77_v5 = vsub.s32 3, %v45_v1  ;;  %v106_v31 = vld [vmem:[#allocation5 + $0x60] sm:$0xff]  ;;  %v117_v37 = vld [vmem:[#allocation5 + $0x50] sm:$0xff] }
  0x2c   :  { %v90_v6 = vsub.s32 4, %v45_v1  ;;  %v99_v7 = vsub.s32 5, %v45_v1  ;;  %v110_v8 = vsub.s32 6, %v45_v1  ;;  %v121_v9 = vsub.s32 7, %v45_v1  ;;  %v87_v38 = vld [vmem:[#allocation5 + $0x28] sm:$0xff]  ;;  %v96_v39 = vld [vmem:[#allocation5 + $0x38] sm:$0xff]  ;;  %p220_p5 = por %p219_p4, %p218_p3 }
  0x2d   :  { %v47_v13 = vrot.slane %v41_v10, %v46_v2  ;;  %v56_v14 = vrot.slane %v41_v10, %v55_v3  ;;  %v67_v16 = vrot.slane %v41_v10, %v66_v4  ;;  %v78_v18 = vrot.slane %v41_v10, %v77_v5  ;;  %v107_v44 = vld [vmem:[#allocation5 + $0x68] sm:$0xff]  ;;  %v118_v45 = vld [vmem:[#allocation5 + $0x58] sm:$0xff] }
  0x2e   :  { %v91_v23 = vrot.slane %v41_v10, %v90_v6  ;;  %v100_v24 = vrot.slane %v41_v10, %v99_v7  ;;  %v111_v25 = vrot.slane %v41_v10, %v110_v8  ;;  %v122_v32 = vrot.slane %v41_v10, %v121_v9  ;;  %p221_p6 = pnand %p220_p5, %p214_p2 }
  0x2f   :  { %v48_v26 = vmul.f32 %v47_v13, %v42_v11  ;;  %v57_v27 = vmul.f32 %v56_v14, %v51_v12  ;;  %v68_v28 = vmul.f32 %v67_v16, %v62_v15  ;;  %v79_v33 = vmul.f32 %v78_v18, %v73_v17 }
  0x30   :  { %v49_v34 = vmul.f32 %v47_v13, %v43_v19  ;;  %v58_v35 = vmul.f32 %v56_v14, %v52_v20  ;;  %v69_v36 = vmul.f32 %v67_v16, %v63_v21  ;;  %v92_v41 = vmul.f32 %v91_v23, %v86_v29 }
  0x31   :  { %v59_v40 = vadd.f32 %v57_v27, %v48_v26  ;;  %v101_v42 = vmul.f32 %v100_v24, %v95_v30  ;;  %v112_v43 = vmul.f32 %v111_v25, %v106_v31  ;;  %v80_v47 = vmul.f32 %v78_v18, %v74_v22 }
  0x32   :  { %v60_v46 = vadd.f32 %v58_v35, %v49_v34  ;;  %v93_v48 = vmul.f32 %v91_v23, %v87_v38  ;;  %v102_v49 = vmul.f32 %v100_v24, %v96_v39  ;;  %v123_v52 = vmul.f32 %v122_v32, %v117_v37 }
  0x33   :  { %v70_v50 = vadd.f32 %v68_v28, %v59_v40  ;;  %v103_v51 = vadd.f32 %v101_v42, %v92_v41  ;;  %v113_v53 = vmul.f32 %v111_v25, %v107_v44  ;;  %v124_v56 = vmul.f32 %v122_v32, %v118_v45 }
  0x34   :  { %v71_v54 = vadd.f32 %v69_v36, %v60_v46  ;;  %v104_v55 = vadd.f32 %v102_v49, %v93_v48 }
  0x35   :  { %v81_v57 = vadd.f32 %v79_v33, %v70_v50  ;;  %v114_v58 = vadd.f32 %v112_v43, %v103_v51 }
  0x36   :  { %v82_v59 = vadd.f32 %v80_v47, %v71_v54  ;;  %v115_v60 = vadd.f32 %v113_v53, %v104_v55 }
  0x37   :  { %83 = vst [vmem:[#allocation7] sm:$0xff] %v81_v57  ;;  %v125_v61 = vadd.f32 %v123_v52, %v114_v58 }
  0x38   :  { %84 = vst [vmem:[#allocation7 + $0x8] sm:$0xff] %v82_v59  ;;  %v126_v62 = vadd.f32 %v124_v56, %v115_v60 }
  0x39   :  { %127 = vst [vmem:[#allocation8] sm:$0xff] %v125_v61 }
  0x3a   :  { %224 = shalt.err (!%p221_p6)
}
  0x3b   :  { %s225_s16 = scalar_lea.hbm %s364_s2, 256 }
  0x3c   :  { %p226_p7 = scmp.ne.s32.totalorder %s364_s2, %s225_s16  ;;  %p229_p8 = scmp.lt.u32.totalorder %s225_s16, %s364_s2 }
  0x3e   :  { %p231_p9 = pnand %p229_p8, %p226_p7 }
  0x40   :  { %234 = shalt.err (!%p231_p9)
}
  0x41   :  { %140 = dma.vmem_to_hbm [thread:$0]  %s135_s10, 256, %s364_s2, [#allocation4], %s267_s0, %s267_s0, %s268_s7   ;;  %128 = vst [vmem:[#allocation8 + $0x8] sm:$0xff] %v126_v62 }
  0x42   :  { %s235_s23 = scalar_lea.vmem %s325_s12, 256  ;;  %p240_p11 = scmp.lt.s32.totalorder %s325_s12, %s325_s12 }
  0x43   :  { %p236_p10 = scmp.ne.s32.totalorder %s325_s12, %s235_s23  ;;  %p241_p12 = scmp.lt.s32.totalorder %s235_s23, %s235_s23 }
  0x45   :  { %p242_p13 = por %p241_p12, %p240_p11 }
  0x47   :  { %p243_p0 = pnand %p242_p13, %p236_p10 }
  0x49   :  { %246 = shalt.err (!%p243_p0)
}
  0x4a   :  { %s247_s26 = scalar_lea.hbm %s365_s3, 256 }
  0x4b   :  { %p248_p1 = scmp.ne.s32.totalorder %s365_s3, %s247_s26  ;;  %p251_p2 = scmp.lt.u32.totalorder %s247_s26, %s365_s3 }
  0x4d   :  { %p253_p3 = pnand %p251_p2, %p248_p1 }
  0x4f   :  { %256 = shalt.err (!%p253_p3)
}
  0x50   :  { %152 = dma.vmem_to_hbm [thread:$0]  %s325_s12, 256, %s365_s3, [#allocation9], %s267_s0, %s267_s0, %s268_s7  }
  0x51   :  { %261 = dma.done.wait [#allocation4], 256  }
  0x52   :  { %262 = vsyncadd [#allocation4], 4294967040 }
  0x53   :  { %263 = dma.done.wait [#allocation9], 256  }
  0x54   :  { %264 = vsyncadd [#allocation9], 4294967040 }
  0x55   :  { %159 = vsyncpa [#allocation3], 1 }
  0x56   :  { %160 = vsyncpa [#allocation6], 1 }
  0x57   :  { %161 = vsyncpa [#allocation4], 1 }
  0x58   :  { %162 = vsyncpa [#allocation9], 1 }

</bundles_post_ra>
